<compile_context>
chip_gen: v6e
topology: v6e:2x2x1
jax: 0.10.0
libtpu: 0.0.40
codegen_flags: <defaults>
</compile_context>

<pallas_src>
import functools

import jax
import jax.numpy as jnp
from jax.experimental import pallas as pl
from jax.experimental.pallas import tpu as pltpu


def _nce_full_c_kernel(pred_ref, labels_ref, out_ref, *, n_total):
    """Single-pass NCE partial: the whole class dim lives in this tile."""
    i = pl.program_id(0)
    pred = pred_ref[...]                                    # (tn, C) native dtype
    labels = labels_ref[...]                                # (tn, 1) int32
    tn, c = pred.shape

    class_ids = jax.lax.broadcasted_iota(jnp.int32, (tn, c), 1)
    label_mask = class_ids == labels

    # Reductions on the native-dtype tile (f32 accumulation); the f32 cast is
    # only on the exp input.
    row_max = jnp.max(pred, axis=1, keepdims=True).astype(jnp.float32)
    sum_exp = jnp.sum(jnp.exp(pred.astype(jnp.float32) - row_max),
                      axis=1, keepdims=True)
    lse_m = jnp.log(sum_exp) + row_max                      # log-sum-exp + M
    pred_sum = jnp.sum(pred, axis=1, keepdims=True, dtype=jnp.float32)
    label_val = jnp.sum(jnp.where(label_mask, pred, jnp.zeros_like(pred)),
                        axis=1, keepdims=True, dtype=jnp.float32)

    nce = (lse_m - label_val) / (c * lse_m - pred_sum)      # (tn, 1)

    # Mask rows past the true batch (ragged last tile) with a select so padded
    # garbage / NaN is discarded.
    row_ids = i * tn + jax.lax.broadcasted_iota(jnp.int32, (tn, 1), 0)
    partial = jnp.sum(jnp.where(row_ids < n_total, nce, 0.0))

    # Single-vreg epilogue: partial into sublane 0 (wrapper sums column 0).
    sub = jax.lax.broadcasted_iota(jnp.int32, (8, 128), 0)
    out_ref[...] = jnp.where(sub == 0, partial, 0.0)


def _nce_flash_kernel(pred_ref, labels_ref, out_ref,
                      m_acc, s_acc, l_acc, p_acc, *, n_total, c_total):
    """Flash-style NCE partial: class dim tiled along the last grid axis."""
    i = pl.program_id(0)
    j = pl.program_id(1)

    @pl.when(j == 0)
    def _():
        m_acc[...] = jnp.full_like(m_acc, -jnp.inf)
        s_acc[...] = jnp.zeros_like(s_acc)
        l_acc[...] = jnp.zeros_like(l_acc)
        p_acc[...] = jnp.zeros_like(p_acc)

    pred = pred_ref[...]                                    # (tn, tc) native
    labels = labels_ref[...]                                # (tn, 1) int32
    tn, tc = pred.shape

    col_ids = j * tc + jax.lax.broadcasted_iota(jnp.int32, (tn, tc), 1)
    label_mask = col_ids == labels

    if c_total % tc != 0:     # static check: last C tile is ragged -> mask cols
        col_valid = col_ids < c_total
        pred_f32 = jnp.where(col_valid, pred.astype(jnp.float32),
                             jnp.float32(-jnp.inf))
        tile_max = jnp.max(pred_f32, axis=1, keepdims=True)
        m_new = jnp.maximum(m_acc[...], tile_max)
        exp_tile = jnp.exp(pred_f32 - m_new)
        pred_sum = jnp.sum(jnp.where(col_valid, pred, jnp.zeros_like(pred)),
                           axis=1, keepdims=True, dtype=jnp.float32)
    else:
        tile_max = jnp.max(pred, axis=1, keepdims=True).astype(jnp.float32)
        m_new = jnp.maximum(m_acc[...], tile_max)
        exp_tile = jnp.exp(pred.astype(jnp.float32) - m_new)
        pred_sum = jnp.sum(pred, axis=1, keepdims=True, dtype=jnp.float32)

    label_val = jnp.sum(jnp.where(label_mask, pred, jnp.zeros_like(pred)),
                        axis=1, keepdims=True, dtype=jnp.float32)

    alpha = jnp.exp(m_acc[...] - m_new)                     # rescale old sum-exp
    s_acc[...] = s_acc[...] * alpha + jnp.sum(exp_tile, axis=1, keepdims=True)
    l_acc[...] = l_acc[...] + label_val
    p_acc[...] = p_acc[...] + pred_sum
    m_acc[...] = m_new

    @pl.when(j == pl.num_programs(1) - 1)
    def _():
        lse_m = jnp.log(s_acc[...]) + m_acc[...]
        nce = (lse_m - l_acc[...]) / (c_total * lse_m - p_acc[...])
        row_ids = i * tn + jax.lax.broadcasted_iota(jnp.int32, (tn, 1), 0)
        partial = jnp.sum(jnp.where(row_ids < n_total, nce, 0.0))
        sub = jax.lax.broadcasted_iota(jnp.int32, (8, 128), 0)
        out_ref[...] = jnp.where(sub == 0, partial, 0.0)


def _round_up8(x):
    return ((x + 7) // 8) * 8


def _vmem_capacity_bytes():
    try:
        info = pltpu.get_tpu_info()
        for name in ("vmem_capacity_bytes", "vmem_size_bytes", "vmem_bytes"):
            v = getattr(info, name, None)
            if v:
                return int(v)
    except Exception:
        pass
    return 64 * 1024 * 1024            # conservative (v7x-sized) fallback


def normalized_cross_entropy(pred, labels, *, scale=1.0, vmem_limit_bytes=None):
    """pred: [N, C] float logits (f32 or bf16), labels: [N] int -> scalar f32."""
    n, c = pred.shape
    itemsize = jnp.dtype(pred.dtype).itemsize

    # Per-generation VMEM budget with headroom under physical VMEM
    # (128 MiB v5e/v6e -> ~96 MiB scoped; 64 MiB v7x -> ~48 MiB).
    if vmem_limit_bytes is None:
        vmem_limit_bytes = min(96 * 1024 * 1024,
                               int(0.75 * _vmem_capacity_bytes()))
    vmem_limit_bytes = int(vmem_limit_bytes)
    budget = int(0.6 * vmem_limit_bytes)   # for input tiles + f32 temporaries

    # Working-set model (all VMEM arrays lane-padded to 128 in the last dim):
    #   2 double-buffered native pred tiles + ~3 f32 elementwise temporaries.
    c_pad = ((c + 127) // 128) * 128
    per_row_full_c = c_pad * (2 * itemsize + 3 * 4) + 1024   # + labels blocks
    cap_rows = (budget // per_row_full_c) // 8 * 8

    if cap_rows >= 8:
        # ---- Path A: whole class dim in one tile; 1-D grid over the batch ----
        if n <= cap_rows:
            if n >= 16:
                # >= 2 roughly even tiles so both v7x TensorCores get work.
                tn = min(_round_up8(pl.cdiv(n, 2)), cap_rows)
            else:
                tn = n                              # full (possibly <8) batch dim
        else:
            nt = pl.cdiv(n, cap_rows)               # evenly sized large tiles
            tn = min(_round_up8(pl.cdiv(n, nt)), cap_rows)
        grid = (pl.cdiv(n, tn),)
        kernel = functools.partial(_nce_full_c_kernel, n_total=n)
        in_specs = [pl.BlockSpec((tn, c), lambda i: (i, 0)),
                    pl.BlockSpec((tn, 1), lambda i: (i, 0))]
        out_specs = pl.BlockSpec((8, 128), lambda i: (i, 0))
        scratch_shapes = []
        dim_sem = ("parallel",)
    else:
        # ---- Path B: vocab-scale C -> flash-style running softmax over C ----
        if n <= 8:
            tn = n
        else:
            tn = min(256, max(8, (n // 8) * 8))
        per_elem = 2 * itemsize + 3 * 4
        fixed = tn * (2 * 512 + 4 * 512)            # labels blocks + accumulators
        tc = max(128, ((budget - fixed) // (tn * per_elem)) // 128 * 128)
        tc = min(tc, c)
        grid = (pl.cdiv(n, tn), pl.cdiv(c, tc))
        kernel = functools.partial(_nce_flash_kernel, n_total=n, c_total=c)
        in_specs = [pl.BlockSpec((tn, tc), lambda i, j: (i, j)),
                    pl.BlockSpec((tn, 1), lambda i, j: (i, 0))]
        out_specs = pl.BlockSpec((8, 128), lambda i, j: (i, 0))
        scratch_shapes = [pltpu.VMEM((tn, 1), jnp.float32) for _ in range(4)]
        dim_sem = ("parallel", "arbitrary")

    labels2d = labels.astype(jnp.int32).reshape(n, 1)
    out_rows = grid[0] * 8

    partials = pl.pallas_call(
        kernel,
        out_shape=jax.ShapeDtypeStruct((out_rows, 128), jnp.float32),
        grid=grid,
        in_specs=in_specs,
        out_specs=out_specs,
        scratch_shapes=scratch_shapes,
        compiler_params=pltpu.CompilerParams(
            dimension_semantics=dim_sem,
            vmem_limit_bytes=vmem_limit_bytes),
        cost_estimate=pl.CostEstimate(
            flops=8 * n * c,
            transcendentals=n * c,
            bytes_accessed=n * c * itemsize + n * 4 + out_rows * 128 * 4),
    )(pred, labels2d)

    # Tiny finalize in plain JAX: column 0 of the stacked (8,128) blocks holds
    # exactly one copy of each tile's partial sum -> exact batch mean + scale.
    return jnp.float32(scale) * jnp.sum(partials[:, 0]) / jnp.float32(n)


def _reference(pred, labels, scale, num_classes):
    # Pure-JAX mirror of the PyTorch NormalizedCrossEntropy module.
    logp = jax.nn.log_softmax(pred.astype(jnp.float32), axis=1)
    one_hot = jax.nn.one_hot(labels, num_classes, dtype=jnp.float32)
    nce = -jnp.sum(one_hot * logp, axis=1) / (-jnp.sum(logp, axis=1))
    return scale * jnp.mean(nce)


if __name__ == "__main__":
    key = jax.random.PRNGKey(0)
    k1, k2, k3, k4 = jax.random.split(key, 4)

    # Primary check: shapes consistent with the module (batch=8, classes=10).
    num_classes, batch, scale = 10, 8, 1.0
    pred = jax.random.normal(k1, (batch, num_classes), dtype=jnp.float32)
    labels = jax.random.randint(k2, (batch,), 0, num_classes, dtype=jnp.int32)
    loss = jax.block_until_ready(
        normalized_cross_entropy(pred, labels, scale=scale))
    ref = _reference(pred, labels, scale, num_classes)
    assert jnp.allclose(loss, ref, rtol=1e-5, atol=1e-6), (loss, ref)

    # Secondary check: multi-tile batch with a ragged (masked) last tile.
    n2, c2 = 20, 12
    pred2 = jax.random.normal(k3, (n2, c2), dtype=jnp.float32)
    labels2 = jax.random.randint(k4, (n2,), 0, c2, dtype=jnp.int32)
    loss2 = jax.block_until_ready(
        normalized_cross_entropy(pred2, labels2, scale=0.5))
    ref2 = _reference(pred2, labels2, 0.5, c2)
    assert jnp.allclose(loss2, ref2, rtol=1e-5, atol=1e-6), (loss2, ref2)

    print("KERNEL_OK")
</pallas_src>

<mosaic_0001>
module attributes {stable_mosaic.version = 11 : i64} {
  func.func @_nce_full_c_kernel(%arg0: i32, %arg1: memref<8x10xf32, #tpu.memory_space<vmem>>, %arg2: memref<8x1xi32, #tpu.memory_space<vmem>>, %arg3: memref<8x128xf32, #tpu.memory_space<vmem>>) attributes {dimension_semantics = [#tpu.dimension_semantics<parallel>], iteration_bounds = array<i64: 1>, scalar_prefetch = 0 : i64, scratch_operands = 0 : i64, tpu.core_type = #tpu.core_type<tc>, window_params = [{transform_indices = @transform_0, window_bounds = array<i64: 8, 10>}, {transform_indices = @transform_1, window_bounds = array<i64: 8, 1>}, {transform_indices = @transform_2, window_bounds = array<i64: 8, 128>}]} {
    %c0 = arith.constant 0 : index
    %c0_0 = arith.constant 0 : index
    %0 = vector.load %arg1[%c0, %c0_0] : memref<8x10xf32, #tpu.memory_space<vmem>>, vector<8x10xf32>
    %c0_1 = arith.constant 0 : index
    %c0_2 = arith.constant 0 : index
    %1 = vector.load %arg2[%c0_1, %c0_2] : memref<8x1xi32, #tpu.memory_space<vmem>>, vector<8x1xi32>
    %2 = tpu.iota {dimensions = array<i32: 1>} : vector<8x10xi32>
    %3 = vector.broadcast %1 : vector<8x1xi32> to vector<8x10xi32>
    %4 = arith.cmpi eq, %2, %3 : vector<8x10xi32>
    %cst = arith.constant dense<0xFF800000> : vector<8xf32>
    %5 = vector.multi_reduction <maximumf>, %0, %cst [1] : vector<8x10xf32> to vector<8xf32>
    %6 = vector.shape_cast %5 : vector<8xf32> to vector<8x1xf32>
    %7 = vector.broadcast %6 : vector<8x1xf32> to vector<8x10xf32>
    %8 = arith.subf %0, %7 : vector<8x10xf32>
    %9 = math.exp %8 : vector<8x10xf32>
    %cst_3 = arith.constant dense<0.000000e+00> : vector<8xf32>
    %10 = vector.multi_reduction <add>, %9, %cst_3 [1] : vector<8x10xf32> to vector<8xf32>
    %11 = vector.shape_cast %10 : vector<8xf32> to vector<8x1xf32>
    %12 = math.log %11 : vector<8x1xf32>
    %13 = arith.addf %12, %6 : vector<8x1xf32>
    %cst_4 = arith.constant dense<0.000000e+00> : vector<8xf32>
    %14 = vector.multi_reduction <add>, %0, %cst_4 [1] : vector<8x10xf32> to vector<8xf32>
    %15 = vector.shape_cast %14 : vector<8xf32> to vector<8x1xf32>
    %cst_5 = arith.constant 0.000000e+00 : f32
    %16 = vector.broadcast %cst_5 : f32 to vector<8x10xf32>
    %17 = arith.select %4, %0, %16 : vector<8x10xi1>, vector<8x10xf32>
    %cst_6 = arith.constant dense<0.000000e+00> : vector<8xf32>
    %18 = vector.multi_reduction <add>, %17, %cst_6 [1] : vector<8x10xf32> to vector<8xf32>
    %19 = vector.shape_cast %18 : vector<8xf32> to vector<8x1xf32>
    %20 = arith.subf %13, %19 : vector<8x1xf32>
    %cst_7 = arith.constant 1.000000e+01 : f32
    %21 = vector.broadcast %cst_7 : f32 to vector<8x1xf32>
    %22 = arith.mulf %21, %13 : vector<8x1xf32>
    %23 = arith.subf %22, %15 : vector<8x1xf32>
    %24 = arith.divf %20, %23 : vector<8x1xf32>
    %c8_i32 = arith.constant 8 : i32
    %25 = arith.muli %arg0, %c8_i32 : i32
    %26 = tpu.iota {dimensions = array<i32: 0>} : vector<8x1xi32>
    %27 = vector.broadcast %25 : i32 to vector<8x1xi32>
    %28 = arith.addi %27, %26 : vector<8x1xi32>
    %c8_i32_8 = arith.constant 8 : i32
    %29 = vector.broadcast %c8_i32_8 : i32 to vector<8x1xi32>
    %30 = arith.cmpi slt, %28, %29 : vector<8x1xi32>
    %cst_9 = arith.constant 0.000000e+00 : f32
    %31 = vector.broadcast %cst_9 : f32 to vector<8x1xf32>
    %32 = arith.select %30, %24, %31 : vector<8x1xi1>, vector<8x1xf32>
    %33 = vector.shape_cast %32 : vector<8x1xf32> to vector<1x8x1xf32>
    %cst_10 = arith.constant dense<0.000000e+00> : vector<1xf32>
    %34 = vector.multi_reduction <add>, %33, %cst_10 [1, 2] : vector<1x8x1xf32> to vector<1xf32>
    %35 = vector.shape_cast %34 : vector<1xf32> to vector<1x1x1xf32>
    %36 = vector.extract %35[0, 0, 0] : f32 from vector<1x1x1xf32>
    %37 = tpu.iota {dimensions = array<i32: 0>} : vector<8x128xi32>
    %c0_i32 = arith.constant 0 : i32
    %38 = vector.broadcast %c0_i32 : i32 to vector<8x128xi32>
    %39 = arith.cmpi eq, %37, %38 : vector<8x128xi32>
    %cst_11 = arith.constant 0.000000e+00 : f32
    %40 = vector.broadcast %36 : f32 to vector<8x128xf32>
    %41 = vector.broadcast %cst_11 : f32 to vector<8x128xf32>
    %42 = arith.select %39, %40, %41 : vector<8x128xi1>, vector<8x128xf32>
    %c0_12 = arith.constant 0 : index
    %c0_13 = arith.constant 0 : index
    %43 = vector.load %arg3[%c0_12, %c0_13] : memref<8x128xf32, #tpu.memory_space<vmem>>, vector<8x128xf32>
    tpu.vector_store %arg3[%c0_12, %c0_13], %42 {strides = array<i32>} : memref<8x128xf32, #tpu.memory_space<vmem>>, vector<8x128xf32>,
    return
  }
  func.func @transform_0(%arg0: i32) -> (i32, i32) {
    %c0_i32 = arith.constant 0 : i32
    %c0_i32_0 = arith.constant 0 : i32
    return %arg0, %c0_i32 : i32, i32
  }
  func.func @transform_1(%arg0: i32) -> (i32, i32) {
    %c0_i32 = arith.constant 0 : i32
    %c0_i32_0 = arith.constant 0 : i32
    return %arg0, %c0_i32 : i32, i32
  }
  func.func @transform_2(%arg0: i32) -> (i32, i32) {
    %c0_i32 = arith.constant 0 : i32
    %c0_i32_0 = arith.constant 0 : i32
    return %arg0, %c0_i32 : i32, i32
  }
}

</mosaic_0001>

<bundles_post_ra>
// kernel: tpu_custom_call.1
= control target key start
LH: loop header
LB: loop body
LE: loop exit
PB: predicated region body
PF: predicated region fallthrough
CT: control target
= control target key end

     0   :  { %vm20_vm0 = vcmask 80896   ;;  %s144_s0 = inlined_call_operand.vmem [shape: f32[8,10], index: 0, kind: input, shape index: {}]   ;;  %s145_s1 = inlined_call_operand.vmem [shape: s32[8,1], index: 1, kind: input, shape index: {}]   ;;  %s146_s2 = inlined_call_operand.hbm [shape: f32[8,128], index: 2, kind: output, shape index: {}]  }
   0x1   :  { %v12_v0 = vld [vmem:[%s144_s0] sm:$0xff] }
   0x2   :  { %7 = vsyncpa [#allocation3], 0  ;;  %v21_v1 = vsel %vm20_vm0, %v12_v0, -inf  ;;  %v114_v2 = vmov 0   ;;  %v13_v3 = vld [vmem:[%s145_s1] sm:$0xff]  ;;  %v14_v7 = vlaneseq  ;;  %v33_v12 = vsel %vm20_vm0, %v12_v0, 0.0 }
   0x3   :  { %85 = vset.pattern.permute.xlu0 %v114_v2  ;;  %vm52_vm2 = vcmask 7168   ;;  %s115_s0 = smov [#allocation2]  }
   0x4   :  { %22 = vmax.xlane.f32.xlu0 %v21_v1  ;;  %v15_v8 = vand.u32 127, %v14_v7  ;;  %v47_v34 = vshrl.u32 %v14_v7, 7  ;;  %s73_s1 = sshll.u32 %s115_s0, 4  ;;  %s74_s1 = int_to_ptr.vmem [resolvable:$true] %s73_s1 }
   0x5   :  { %s92_s14 = scalar_lea.vmem %s74_s1, 128  ;;  %p97_p1 = scmp.lt.s32.totalorder %s74_s1, %s74_s1 }
   0x6   :  { %vm63_vm3 = vcmp.eq.s32.totalorder %v47_v34, 0  ;;  %p93_p0 = scmp.ne.s32.totalorder %s74_s1, %s92_s14  ;;  %p98_p2 = scmp.lt.s32.totalorder %s92_s14, %s92_s14 }
   0x8   :  { %p99_p3 = por %p98_p2, %p97_p1 }
   0xa   :  { %p100_p4 = pnand %p99_p3, %p93_p0 }
  0x1a   :  { %17 = vperm.xlu0 %85, %v13_v3  }
  0x8d   :  { %v23_v4 = vpop.xlane.xlu0 %22 }
  0x8e   :  { %v24_v5 = vsub.f32 %v12_v0, %v23_v4 }
  0x90   :  { %v25_v6 = vmul.f32 1.442695, %v24_v5 }
  0x92   :  { %86 = vpow2.f32 %v25_v6 }
  0x95   :  { %v18_v9 = vpop.permute.xlu0 %17 }
  0x96   :  { %vm19_vm1 = vcmp.eq.s32.totalorder %v15_v8, %v18_v9 }
  0x97   :  { %v36_v13 = vsel %vm19_vm1, %v12_v0, 0.0 }
  0x98   :  { %v37_v14 = vsel %vm20_vm0, %v36_v13, 0.0 }
  0x9f   :  { %v87_v10 = vpop.eup %86 }
  0xa0   :  { %v27_v11 = vsel %vm20_vm0, %v87_v10, 0.0 }
  0xa1   :  { %28 = vadd.xlane.f32.xlu1 %v27_v11 }
  0xa5   :  { %34 = vadd.xlane.f32.xlu1 %v33_v12 }
  0xa9   :  { %38 = vadd.xlane.f32.xlu1 %v37_v14 }
 0x12a   :  { %v29_v15 = vpop.xlane.xlu1 %28 }
 0x12b   :  { %88 = vlog2.f32 %v29_v15 }
 0x12e   :  { %v35_v20 = vpop.xlane.xlu1 %34 }
 0x132   :  { %v39_v22 = vpop.xlane.xlu1 %38 }
 0x138   :  { %v89_v16 = vpop.eup %88 }
 0x139   :  { %v31_v17 = vmul.f32 0.6931472, %v89_v16 }
 0x13b   :  { %v32_v18 = vadd.f32 %v31_v17, %v23_v4 }
 0x13d   :  { %v41_v19 = vmul.f32 10.0, %v32_v18  ;;  %v40_v23 = vsub.f32 %v32_v18, %v39_v22 }
 0x13f   :  { %v42_v21 = vsub.f32 %v41_v19, %v35_v20 }
 0x141   :  { %90 = vrcp.f32 %v42_v21 }
 0x14e   :  { %v91_v24 = vpop.eup %90 }
 0x14f   :  { %v44_v25 = vmul.f32 %v91_v24, %v40_v23 }
 0x151   :  { %v53_v26 = vsel %vm52_vm2, %v44_v25, 0.0 }
 0x152   :  { %54 = vadd.xlane.f32.xlu1 %v53_v26 }
 0x1db   :  { %v55_v27 = vpop.xlane.xlu1 %54 }
 0x1dc   :  { %v56_v28 = vrot.slane %v55_v27, 4 }
 0x1de   :  { %v57_v29 = vadd.f32 %v56_v28, %v55_v27 }
 0x1e0   :  { %v58_v30 = vrot.slane %v57_v29, 2 }
 0x1e2   :  { %v59_v31 = vadd.f32 %v58_v30, %v57_v29 }
 0x1e4   :  { %v60_v32 = vrot.slane %v59_v31, 1 }
 0x1e6   :  { %v61_v33 = vadd.f32 %v60_v32, %v59_v31 }
 0x1e8   :  { %81 = vpush %v61_v33 }
 0x219   :  { %s82_s13 = spop %81 }
 0x21a   :  { %v64_v35 = vstv %s82_s13 }
 0x21b   :  { %v65_v36 = vsel %vm63_vm3, %v64_v35, 0.0 }
 0x21c   :  { %66 = vst [vmem:[#allocation2] sm:$0xff] %v65_v36 }
 0x21d   :  { %103 = shalt.err (!%p100_p4)
}
 0x21e   :  { %76 = dma.vmem_to_hbm [thread:$0]  %s74_s1, 128, %s146_s2, [#allocation3]  }
 0x21f   :  { %112 = dma.done.wait [#allocation3], 128  }
 0x220   :  { %113 = vsyncadd [#allocation3], 4294967168 }
 0x221   :  { %80 = vsyncpa [#allocation3], 1 }

</bundles_post_ra>
